<compile_context>
chip_gen: v7x
topology: tpu7x:2x2x1
jax: 0.10.0
libtpu: 0.0.40
codegen_flags: <defaults>
</compile_context>

<pallas_src>
import functools

import jax
import jax.numpy as jnp
from jax import lax
from jax.experimental import pallas as pl
from jax.experimental.pallas import tpu as pltpu


# --------------------------------------------------------------------------------------------
# Kernels
# --------------------------------------------------------------------------------------------

def _leaky_chunk_f32(x_ref, i, negative_slope):
    """LeakyReLU of the (c_tile, HW) chunk x_ref[i], computed in float32."""
    xc = x_ref[i].astype(jnp.float32)
    return jnp.where(xc >= 0.0, xc, jnp.float32(negative_slope) * xc)


def _fused_kernel(x_ref, gamma_ref, beta_ref, o_ref, sum_ref, ssq_ref, *,
                  negative_slope, eps):
    """One channel tile holds the full (N, HW) extent: exact batch stats in one sweep.

    x_ref/o_ref: (N, c_tile, HW); gamma/beta: (c_tile, 1) f32; sum/ssq: (c_tile, 1) f32 scratch.
    """
    n = x_ref.shape[0]
    hw = x_ref.shape[2]
    unroll = bool(n <= 8)

    sum_ref[...] = jnp.zeros_like(sum_ref)
    ssq_ref[...] = jnp.zeros_like(ssq_ref)

    # Pass 1: accumulate per-channel sum / sum-of-squares in f32, chunked over the batch axis
    # (no block-sized LeakyReLU temporary; the lane reduce goes to the XLU).
    def stats_body(i, carry):
        y = _leaky_chunk_f32(x_ref, i, negative_slope)
        sum_ref[...] += jnp.sum(y, axis=-1, keepdims=True)
        ssq_ref[...] += jnp.sum(y * y, axis=-1, keepdims=True)
        return carry

    lax.fori_loop(0, n, stats_body, 0, unroll=unroll)

    inv_count = jnp.float32(1.0 / (n * hw))
    mean = sum_ref[...] * inv_count
    var = jnp.maximum(ssq_ref[...] * inv_count - mean * mean, 0.0)   # biased (train-mode) var
    scale = gamma_ref[...] * lax.rsqrt(var + jnp.float32(eps))       # EUP rsqrt
    shift = beta_ref[...] - mean * scale

    # Pass 2: recompute LeakyReLU per chunk; single FMA per element on the store path.
    def write_body(i, carry):
        y = _leaky_chunk_f32(x_ref, i, negative_slope)
        o_ref[i] = (y * scale + shift).astype(o_ref.dtype)
        return carry

    lax.fori_loop(0, n, write_body, 0, unroll=unroll)


def _stats_kernel(x_ref, sum_ref, ssq_ref, *, negative_slope):
    """Accumulate per-channel sum / sumsq of LeakyReLU(x) across the batch-tile grid axis.

    x_ref: (n_tile, c_tile, HW); sum/ssq: (c_tile, 1) f32 outputs, resident across grid axis 1.
    """
    @pl.when(pl.program_id(1) == 0)
    def _():
        sum_ref[...] = jnp.zeros_like(sum_ref)
        ssq_ref[...] = jnp.zeros_like(ssq_ref)

    n = x_ref.shape[0]

    def body(i, carry):
        y = _leaky_chunk_f32(x_ref, i, negative_slope)
        sum_ref[...] += jnp.sum(y, axis=-1, keepdims=True)
        ssq_ref[...] += jnp.sum(y * y, axis=-1, keepdims=True)
        return carry

    lax.fori_loop(0, n, body, 0, unroll=bool(n <= 8))


def _norm_kernel(x_ref, scale_ref, shift_ref, o_ref, *, negative_slope):
    """Elementwise LeakyReLU + per-channel affine normalize (fallback pass 2)."""
    scale = scale_ref[...]          # (c_tile, 1) f32
    shift = shift_ref[...]
    n = x_ref.shape[0]

    def body(i, carry):
        y = _leaky_chunk_f32(x_ref, i, negative_slope)
        o_ref[i] = (y * scale + shift).astype(o_ref.dtype)
        return carry

    lax.fori_loop(0, n, body, 0, unroll=bool(n <= 8))


# --------------------------------------------------------------------------------------------
# Tile / budget selection
# --------------------------------------------------------------------------------------------

def _vmem_capacity_bytes():
    try:
        return int(pltpu.get_tpu_info().vmem_capacity_bytes)
    except Exception:
        return 64 * 1024 * 1024   # conservative: v7x per-TensorCore VMEM


def _sublane_min(itemsize):
    # Packed dtypes need more sublanes per tile: f32 -> 8, bf16/f16 -> 16, int8/fp8 -> 32.
    return max(8, 8 * (4 // max(1, itemsize)))


def _channel_tile_candidates(c, c_min):
    cands = {t for t in range(c_min, c + 1, c_min) if c % t == 0}
    cands.add(c)          # a full-C block dim is always legal (equals the array dim)
    return sorted(cands)


def _divisors(n):
    return sorted({d for d in range(1, n + 1) if n % d == 0})


def _pick_fused_c_tile(c, c_min, bytes_per_channel, budget, want_steps=4):
    """Largest legal channel tile that fits the budget; prefer >=4 (then >=2) grid steps so the
    'parallel' channel axis gives v7x megacore something to shard."""
    cands = _channel_tile_candidates(c, c_min)
    for steps_req in (want_steps, 2, 1):
        ok = [t for t in cands
              if t * bytes_per_channel <= budget and (c // t) >= steps_req]
        if ok:
            return max(ok)
    return None   # nothing fits -> caller uses the two-pass fallback


def _pick_fallback_tiles(n, c, hw, itemsize, c_min, budget):
    """(n_tile, c_tile) for the two-pass path.  Per-step footprint ~=
       4 * n_tile*c_tile*HW*itemsize (2x in + 2x out buffers) + 4 * c_tile*HW*4 (f32 chunk temps)."""
    def footprint(n_tile, c_tile):
        return 4 * n_tile * c_tile * hw * itemsize + 4 * c_tile * hw * 4

    c_cands = _channel_tile_candidates(c, c_min)
    fitting = [t for t in c_cands if footprint(1, t) <= budget]
    # TODO(synk): if even (1, c_min, HW) overflows the budget (enormous H*W), additionally tile
    # the spatial axis; realistic CNN activations never hit this.
    c_tile = max(fitting) if fitting else min(c_cands)

    n_fit = [d for d in _divisors(n) if footprint(d, c_tile) <= budget]
    n_tile = max(n_fit) if n_fit else 1
    return n_tile, c_tile


# --------------------------------------------------------------------------------------------
# Wrapper
# --------------------------------------------------------------------------------------------

def lrelu_bn2d(x, gamma, beta, *, negative_slope=0.01, eps=1e-5,
               block_budget_bytes=None, force_two_pass=False):
    """LeakyReLU followed by BatchNorm2d with training-mode (biased) batch statistics.

    x: (N, C, H, W); gamma, beta: (C,).  Matches the torch LReLu_BN2d forward in train mode.
    """
    N, C, H, W = x.shape
    HW = H * W
    itemsize = jnp.dtype(x.dtype).itemsize
    c_min = _sublane_min(itemsize)

    x2 = x.reshape(N, C, HW)                                # contiguous reshape: free
    gamma_f32 = gamma.astype(jnp.float32).reshape(C, 1)     # keep affine params in f32
    beta_f32 = beta.astype(jnp.float32).reshape(C, 1)

    cap = _vmem_capacity_bytes()
    if block_budget_bytes is None:
        # ~half of VMEM for pipelined blocks + in-kernel temporaries; the rest stays free for
        # Mosaic internal scratch.  -> ~64 MiB on v5e/v6e (128 MiB VMEM), ~32 MiB on v7x (64 MiB).
        block_budget_bytes = max(16 << 20, min(cap // 2, cap - (24 << 20)))
    vmem_limit = int(min(cap - (2 << 20),
                         max(32 << 20, block_budget_bytes + (16 << 20))))

    # ---------------- fast path: full (N, HW) per channel tile, one HBM read + one write -------
    # Per-channel cost: 2x in + 2x out double-buffered blocks + ~4 f32 chunk temp rows.
    fused_bytes_per_channel = 4 * N * HW * itemsize + 4 * HW * 4
    c_tile = None
    if not force_two_pass:
        c_tile = _pick_fused_c_tile(C, c_min, fused_bytes_per_channel, block_budget_bytes)

    if c_tile is not None:
        kernel = functools.partial(_fused_kernel, negative_slope=negative_slope, eps=eps)
        out = pl.pallas_call(
            kernel,
            out_shape=jax.ShapeDtypeStruct((N, C, HW), x.dtype),
            grid=(C // c_tile,),
            in_specs=[
                pl.BlockSpec((N, c_tile, HW), lambda c: (0, c, 0)),
                pl.BlockSpec((c_tile, 1), lambda c: (c, 0)),
                pl.BlockSpec((c_tile, 1), lambda c: (c, 0)),
            ],
            out_specs=pl.BlockSpec((N, c_tile, HW), lambda c: (0, c, 0)),
            scratch_shapes=[
                pltpu.VMEM((c_tile, 1), jnp.float32),
                pltpu.VMEM((c_tile, 1), jnp.float32),
            ],
            compiler_params=pltpu.CompilerParams(
                dimension_semantics=("parallel",),
                vmem_limit_bytes=vmem_limit,
            ),
            cost_estimate=pl.CostEstimate(
                flops=10 * N * C * HW,
                transcendentals=C,
                bytes_accessed=2 * N * C * HW * itemsize + 8 * C,
            ),
        )(x2, gamma_f32, beta_f32)
        return out.reshape(N, C, H, W)

    # ---------------- fallback: two-pass (stats sweep + normalize sweep), any shape ------------
    n_tile, c_tile = _pick_fallback_tiles(N, C, HW, itemsize, c_min, block_budget_bytes)
    c_grid = C // c_tile
    n_grid = N // n_tile

    s, ss = pl.pallas_call(
        functools.partial(_stats_kernel, negative_slope=negative_slope),
        out_shape=(jax.ShapeDtypeStruct((C, 1), jnp.float32),
                   jax.ShapeDtypeStruct((C, 1), jnp.float32)),
        grid=(c_grid, n_grid),
        in_specs=[pl.BlockSpec((n_tile, c_tile, HW), lambda c, n: (n, c, 0))],
        out_specs=(pl.BlockSpec((c_tile, 1), lambda c, n: (c, 0)),
                   pl.BlockSpec((c_tile, 1), lambda c, n: (c, 0))),
        compiler_params=pltpu.CompilerParams(
            dimension_semantics=("parallel", "arbitrary"),
            vmem_limit_bytes=vmem_limit,
        ),
        cost_estimate=pl.CostEstimate(
            flops=5 * N * C * HW,
            transcendentals=0,
            bytes_accessed=N * C * HW * itemsize + 8 * C,
        ),
    )(x2)

    # Tiny per-channel folding in plain JAX (f32).
    inv_count = jnp.float32(1.0 / (N * HW))
    mean = s * inv_count
    var = jnp.maximum(ss * inv_count - mean * mean, 0.0)
    scale = gamma_f32 * lax.rsqrt(var + jnp.float32(eps))     # (C, 1) f32
    shift = beta_f32 - mean * scale

    out = pl.pallas_call(
        functools.partial(_norm_kernel, negative_slope=negative_slope),
        out_shape=jax.ShapeDtypeStruct((N, C, HW), x.dtype),
        grid=(c_grid, n_grid),
        in_specs=[
            pl.BlockSpec((n_tile, c_tile, HW), lambda c, n: (n, c, 0)),
            pl.BlockSpec((c_tile, 1), lambda c, n: (c, 0)),
            pl.BlockSpec((c_tile, 1), lambda c, n: (c, 0)),
        ],
        out_specs=pl.BlockSpec((n_tile, c_tile, HW), lambda c, n: (n, c, 0)),
        compiler_params=pltpu.CompilerParams(
            dimension_semantics=("parallel", "parallel"),
            vmem_limit_bytes=vmem_limit,
        ),
        cost_estimate=pl.CostEstimate(
            flops=5 * N * C * HW,
            transcendentals=0,
            bytes_accessed=2 * N * C * HW * itemsize + 12 * C,
        ),
    )(x2, scale, shift)
    return out.reshape(N, C, H, W)


# --------------------------------------------------------------------------------------------
# Reference + test
# --------------------------------------------------------------------------------------------

def lrelu_bn2d_ref(x, gamma, beta, *, negative_slope=0.01, eps=1e-5):
    """Pure-JAX reference: LeakyReLU then BatchNorm2d with biased batch stats (train mode)."""
    y = jnp.where(x >= 0, x, negative_slope * x).astype(jnp.float32)
    mean = jnp.mean(y, axis=(0, 2, 3), keepdims=True)
    var = jnp.mean((y - mean) ** 2, axis=(0, 2, 3), keepdims=True)
    g = gamma.astype(jnp.float32).reshape(1, -1, 1, 1)
    b = beta.astype(jnp.float32).reshape(1, -1, 1, 1)
    return ((y - mean) / jnp.sqrt(var + eps) * g + b).astype(x.dtype)


if __name__ == "__main__":
    key = jax.random.PRNGKey(0)
    kx, kg, kb, kx2, kg2, kb2 = jax.random.split(key, 6)

    # Small shape consistent with the module: batch=2, features=4, spatial=16x16.
    N, C, H, W = 2, 4, 16, 16
    x = jax.random.normal(kx, (N, C, H, W), dtype=jnp.float32)
    gamma = 1.0 + 0.1 * jax.random.normal(kg, (C,), dtype=jnp.float32)
    beta = 0.1 * jax.random.normal(kb, (C,), dtype=jnp.float32)

    out = jax.block_until_ready(lrelu_bn2d(x, gamma, beta, negative_slope=0.01, eps=1e-5))
    ref = lrelu_bn2d_ref(x, gamma, beta, negative_slope=0.01, eps=1e-5)
    assert out.shape == (N, C, H, W)
    assert jnp.allclose(out, ref, atol=1e-4, rtol=1e-4), "fused path mismatch vs reference"

    # Also exercise the large-shape fallback (two-pass stats + normalize) with a tiny forced
    # block budget so both the channel and batch axes are tiled and stats accumulate across
    # multiple 'arbitrary' grid steps.
    N2, C2, H2, W2 = 4, 16, 8, 8
    x_big = jax.random.normal(kx2, (N2, C2, H2, W2), dtype=jnp.float32)
    gamma2 = 1.0 + 0.1 * jax.random.normal(kg2, (C2,), dtype=jnp.float32)
    beta2 = 0.1 * jax.random.normal(kb2, (C2,), dtype=jnp.float32)
    out2 = jax.block_until_ready(
        lrelu_bn2d(x_big, gamma2, beta2, negative_slope=0.01, eps=1e-5,
                   force_two_pass=True, block_budget_bytes=24 * 1024))
    ref2 = lrelu_bn2d_ref(x_big, gamma2, beta2, negative_slope=0.01, eps=1e-5)
    assert jnp.allclose(out2, ref2, atol=1e-4, rtol=1e-4), "two-pass path mismatch vs reference"

    print("KERNEL_OK")
</pallas_src>

<mosaic_0001>
module attributes {stable_mosaic.version = 11 : i64} {
  func.func @_fused_kernel(%arg0: i32, %arg1: memref<2x4x256xf32, #tpu.memory_space<vmem>>, %arg2: memref<4x1xf32, #tpu.memory_space<vmem>>, %arg3: memref<4x1xf32, #tpu.memory_space<vmem>>, %arg4: memref<2x4x256xf32, #tpu.memory_space<vmem>>, %arg5: memref<4x1xf32, #tpu.memory_space<vmem>>, %arg6: memref<4x1xf32, #tpu.memory_space<vmem>>) attributes {dimension_semantics = [#tpu.dimension_semantics<parallel>], iteration_bounds = array<i64: 1>, scalar_prefetch = 0 : i64, scratch_operands = 2 : i64, tpu.core_type = #tpu.core_type<tc>, window_params = [{transform_indices = @transform_0, window_bounds = array<i64: 2, 4, 256>}, {transform_indices = @transform_1, window_bounds = array<i64: 4, 1>}, {transform_indices = @transform_2, window_bounds = array<i64: 4, 1>}, {transform_indices = @transform_3, window_bounds = array<i64: 2, 4, 256>}]} {
    %cst = arith.constant 0.000000e+00 : f32
    %0 = vector.broadcast %cst : f32 to vector<4x1xf32>
    %c0 = arith.constant 0 : index
    %c0_0 = arith.constant 0 : index
    %1 = vector.load %arg5[%c0, %c0_0] : memref<4x1xf32, #tpu.memory_space<vmem>>, vector<4x1xf32>
    tpu.vector_store %arg5[%c0, %c0_0], %0 {strides = array<i32>} : memref<4x1xf32, #tpu.memory_space<vmem>>, vector<4x1xf32>,
    %cst_1 = arith.constant 0.000000e+00 : f32
    %2 = vector.broadcast %cst_1 : f32 to vector<4x1xf32>
    %c0_2 = arith.constant 0 : index
    %c0_3 = arith.constant 0 : index
    %3 = vector.load %arg6[%c0_2, %c0_3] : memref<4x1xf32, #tpu.memory_space<vmem>>, vector<4x1xf32>
    tpu.vector_store %arg6[%c0_2, %c0_3], %2 {strides = array<i32>} : memref<4x1xf32, #tpu.memory_space<vmem>>, vector<4x1xf32>,
    %c0_i32 = arith.constant 0 : i32
    %4 = arith.index_cast %c0_i32 : i32 to index
    %c0_4 = arith.constant 0 : index
    %c0_5 = arith.constant 0 : index
    %5 = vector.load %arg1[%4, %c0_4, %c0_5] : memref<2x4x256xf32, #tpu.memory_space<vmem>>, vector<1x4x256xf32>
    %6 = vector.shape_cast %5 : vector<1x4x256xf32> to vector<4x256xf32>
    %cst_6 = arith.constant 0.000000e+00 : f32
    %7 = vector.broadcast %cst_6 : f32 to vector<4x256xf32>
    %8 = arith.cmpf oge, %6, %7 : vector<4x256xf32>
    %cst_7 = arith.constant 0.00999999977 : f32
    %9 = vector.broadcast %cst_7 : f32 to vector<4x256xf32>
    %10 = arith.mulf %9, %6 : vector<4x256xf32>
    %11 = arith.select %8, %6, %10 : vector<4x256xi1>, vector<4x256xf32>
    %c0_8 = arith.constant 0 : index
    %c0_9 = arith.constant 0 : index
    %12 = vector.load %arg5[%c0_8, %c0_9] : memref<4x1xf32, #tpu.memory_space<vmem>>, vector<4x1xf32>
    %cst_10 = arith.constant dense<0.000000e+00> : vector<4xf32>
    %13 = vector.multi_reduction <add>, %11, %cst_10 [1] : vector<4x256xf32> to vector<4xf32>
    %14 = vector.shape_cast %13 : vector<4xf32> to vector<4x1xf32>
    %15 = arith.addf %12, %14 : vector<4x1xf32>
    %c0_11 = arith.constant 0 : index
    %c0_12 = arith.constant 0 : index
    %16 = vector.load %arg5[%c0_11, %c0_12] : memref<4x1xf32, #tpu.memory_space<vmem>>, vector<4x1xf32>
    tpu.vector_store %arg5[%c0_11, %c0_12], %15 {strides = array<i32>} : memref<4x1xf32, #tpu.memory_space<vmem>>, vector<4x1xf32>,
    %c0_13 = arith.constant 0 : index
    %c0_14 = arith.constant 0 : index
    %17 = vector.load %arg6[%c0_13, %c0_14] : memref<4x1xf32, #tpu.memory_space<vmem>>, vector<4x1xf32>
    %18 = arith.mulf %11, %11 : vector<4x256xf32>
    %cst_15 = arith.constant dense<0.000000e+00> : vector<4xf32>
    %19 = vector.multi_reduction <add>, %18, %cst_15 [1] : vector<4x256xf32> to vector<4xf32>
    %20 = vector.shape_cast %19 : vector<4xf32> to vector<4x1xf32>
    %21 = arith.addf %17, %20 : vector<4x1xf32>
    %c0_16 = arith.constant 0 : index
    %c0_17 = arith.constant 0 : index
    %22 = vector.load %arg6[%c0_16, %c0_17] : memref<4x1xf32, #tpu.memory_space<vmem>>, vector<4x1xf32>
    tpu.vector_store %arg6[%c0_16, %c0_17], %21 {strides = array<i32>} : memref<4x1xf32, #tpu.memory_space<vmem>>, vector<4x1xf32>,
    %c1_i32 = arith.constant 1 : i32
    %23 = arith.index_cast %c1_i32 : i32 to index
    %c0_18 = arith.constant 0 : index
    %c0_19 = arith.constant 0 : index
    %24 = vector.load %arg1[%23, %c0_18, %c0_19] : memref<2x4x256xf32, #tpu.memory_space<vmem>>, vector<1x4x256xf32>
    %25 = vector.shape_cast %24 : vector<1x4x256xf32> to vector<4x256xf32>
    %cst_20 = arith.constant 0.000000e+00 : f32
    %26 = vector.broadcast %cst_20 : f32 to vector<4x256xf32>
    %27 = arith.cmpf oge, %25, %26 : vector<4x256xf32>
    %cst_21 = arith.constant 0.00999999977 : f32
    %28 = vector.broadcast %cst_21 : f32 to vector<4x256xf32>
    %29 = arith.mulf %28, %25 : vector<4x256xf32>
    %30 = arith.select %27, %25, %29 : vector<4x256xi1>, vector<4x256xf32>
    %c0_22 = arith.constant 0 : index
    %c0_23 = arith.constant 0 : index
    %31 = vector.load %arg5[%c0_22, %c0_23] : memref<4x1xf32, #tpu.memory_space<vmem>>, vector<4x1xf32>
    %cst_24 = arith.constant dense<0.000000e+00> : vector<4xf32>
    %32 = vector.multi_reduction <add>, %30, %cst_24 [1] : vector<4x256xf32> to vector<4xf32>
    %33 = vector.shape_cast %32 : vector<4xf32> to vector<4x1xf32>
    %34 = arith.addf %31, %33 : vector<4x1xf32>
    %c0_25 = arith.constant 0 : index
    %c0_26 = arith.constant 0 : index
    %35 = vector.load %arg5[%c0_25, %c0_26] : memref<4x1xf32, #tpu.memory_space<vmem>>, vector<4x1xf32>
    tpu.vector_store %arg5[%c0_25, %c0_26], %34 {strides = array<i32>} : memref<4x1xf32, #tpu.memory_space<vmem>>, vector<4x1xf32>,
    %c0_27 = arith.constant 0 : index
    %c0_28 = arith.constant 0 : index
    %36 = vector.load %arg6[%c0_27, %c0_28] : memref<4x1xf32, #tpu.memory_space<vmem>>, vector<4x1xf32>
    %37 = arith.mulf %30, %30 : vector<4x256xf32>
    %cst_29 = arith.constant dense<0.000000e+00> : vector<4xf32>
    %38 = vector.multi_reduction <add>, %37, %cst_29 [1] : vector<4x256xf32> to vector<4xf32>
    %39 = vector.shape_cast %38 : vector<4xf32> to vector<4x1xf32>
    %40 = arith.addf %36, %39 : vector<4x1xf32>
    %c0_30 = arith.constant 0 : index
    %c0_31 = arith.constant 0 : index
    %41 = vector.load %arg6[%c0_30, %c0_31] : memref<4x1xf32, #tpu.memory_space<vmem>>, vector<4x1xf32>
    tpu.vector_store %arg6[%c0_30, %c0_31], %40 {strides = array<i32>} : memref<4x1xf32, #tpu.memory_space<vmem>>, vector<4x1xf32>,
    %c2_i32 = arith.constant 2 : i32
    %c0_32 = arith.constant 0 : index
    %c0_33 = arith.constant 0 : index
    %42 = vector.load %arg5[%c0_32, %c0_33] : memref<4x1xf32, #tpu.memory_space<vmem>>, vector<4x1xf32>
    %cst_34 = arith.constant 0.001953125 : f32
    %43 = vector.broadcast %cst_34 : f32 to vector<4x1xf32>
    %44 = arith.mulf %42, %43 : vector<4x1xf32>
    %c0_35 = arith.constant 0 : index
    %c0_36 = arith.constant 0 : index
    %45 = vector.load %arg6[%c0_35, %c0_36] : memref<4x1xf32, #tpu.memory_space<vmem>>, vector<4x1xf32>
    %cst_37 = arith.constant 0.001953125 : f32
    %46 = vector.broadcast %cst_37 : f32 to vector<4x1xf32>
    %47 = arith.mulf %45, %46 : vector<4x1xf32>
    %48 = arith.mulf %44, %44 : vector<4x1xf32>
    %49 = arith.subf %47, %48 : vector<4x1xf32>
    %cst_38 = arith.constant 0.000000e+00 : f32
    %50 = vector.broadcast %cst_38 : f32 to vector<4x1xf32>
    %51 = arith.maximumf %49, %50 : vector<4x1xf32>
    %c0_39 = arith.constant 0 : index
    %c0_40 = arith.constant 0 : index
    %52 = vector.load %arg2[%c0_39, %c0_40] : memref<4x1xf32, #tpu.memory_space<vmem>>, vector<4x1xf32>
    %cst_41 = arith.constant 9.99999974E-6 : f32
    %53 = vector.broadcast %cst_41 : f32 to vector<4x1xf32>
    %54 = arith.addf %51, %53 : vector<4x1xf32>
    %55 = math.rsqrt %54 : vector<4x1xf32>
    %56 = arith.mulf %52, %55 : vector<4x1xf32>
    %c0_42 = arith.constant 0 : index
    %c0_43 = arith.constant 0 : index
    %57 = vector.load %arg3[%c0_42, %c0_43] : memref<4x1xf32, #tpu.memory_space<vmem>>, vector<4x1xf32>
    %58 = arith.mulf %44, %56 : vector<4x1xf32>
    %59 = arith.subf %57, %58 : vector<4x1xf32>
    %c0_i32_44 = arith.constant 0 : i32
    %60 = arith.index_cast %c0_i32_44 : i32 to index
    %c0_45 = arith.constant 0 : index
    %c0_46 = arith.constant 0 : index
    %61 = vector.load %arg1[%60, %c0_45, %c0_46] : memref<2x4x256xf32, #tpu.memory_space<vmem>>, vector<1x4x256xf32>
    %62 = vector.shape_cast %61 : vector<1x4x256xf32> to vector<4x256xf32>
    %cst_47 = arith.constant 0.000000e+00 : f32
    %63 = vector.broadcast %cst_47 : f32 to vector<4x256xf32>
    %64 = arith.cmpf oge, %62, %63 : vector<4x256xf32>
    %cst_48 = arith.constant 0.00999999977 : f32
    %65 = vector.broadcast %cst_48 : f32 to vector<4x256xf32>
    %66 = arith.mulf %65, %62 : vector<4x256xf32>
    %67 = arith.select %64, %62, %66 : vector<4x256xi1>, vector<4x256xf32>
    %68 = vector.broadcast %56 : vector<4x1xf32> to vector<4x256xf32>
    %69 = arith.mulf %67, %68 : vector<4x256xf32>
    %70 = vector.broadcast %59 : vector<4x1xf32> to vector<4x256xf32>
    %71 = arith.addf %69, %70 : vector<4x256xf32>
    %72 = arith.index_cast %c0_i32_44 : i32 to index
    %c0_49 = arith.constant 0 : index
    %c0_50 = arith.constant 0 : index
    %73 = vector.load %arg4[%72, %c0_49, %c0_50] : memref<2x4x256xf32, #tpu.memory_space<vmem>>, vector<1x4x256xf32>
    %74 = vector.shape_cast %73 : vector<1x4x256xf32> to vector<4x256xf32>
    %75 = vector.shape_cast %71 : vector<4x256xf32> to vector<1x4x256xf32>
    tpu.vector_store %arg4[%72, %c0_49, %c0_50], %75 {strides = array<i32>} : memref<2x4x256xf32, #tpu.memory_space<vmem>>, vector<1x4x256xf32>,
    %c1_i32_51 = arith.constant 1 : i32
    %76 = arith.index_cast %c1_i32_51 : i32 to index
    %c0_52 = arith.constant 0 : index
    %c0_53 = arith.constant 0 : index
    %77 = vector.load %arg1[%76, %c0_52, %c0_53] : memref<2x4x256xf32, #tpu.memory_space<vmem>>, vector<1x4x256xf32>
    %78 = vector.shape_cast %77 : vector<1x4x256xf32> to vector<4x256xf32>
    %cst_54 = arith.constant 0.000000e+00 : f32
    %79 = vector.broadcast %cst_54 : f32 to vector<4x256xf32>
    %80 = arith.cmpf oge, %78, %79 : vector<4x256xf32>
    %cst_55 = arith.constant 0.00999999977 : f32
    %81 = vector.broadcast %cst_55 : f32 to vector<4x256xf32>
    %82 = arith.mulf %81, %78 : vector<4x256xf32>
    %83 = arith.select %80, %78, %82 : vector<4x256xi1>, vector<4x256xf32>
    %84 = vector.broadcast %56 : vector<4x1xf32> to vector<4x256xf32>
    %85 = arith.mulf %83, %84 : vector<4x256xf32>
    %86 = vector.broadcast %59 : vector<4x1xf32> to vector<4x256xf32>
    %87 = arith.addf %85, %86 : vector<4x256xf32>
    %88 = arith.index_cast %c1_i32_51 : i32 to index
    %c0_56 = arith.constant 0 : index
    %c0_57 = arith.constant 0 : index
    %89 = vector.load %arg4[%88, %c0_56, %c0_57] : memref<2x4x256xf32, #tpu.memory_space<vmem>>, vector<1x4x256xf32>
    %90 = vector.shape_cast %89 : vector<1x4x256xf32> to vector<4x256xf32>
    %91 = vector.shape_cast %87 : vector<4x256xf32> to vector<1x4x256xf32>
    tpu.vector_store %arg4[%88, %c0_56, %c0_57], %91 {strides = array<i32>} : memref<2x4x256xf32, #tpu.memory_space<vmem>>, vector<1x4x256xf32>,
    %c2_i32_58 = arith.constant 2 : i32
    return
  }
  func.func @transform_0(%arg0: i32) -> (i32, i32, i32) {
    %c0_i32 = arith.constant 0 : i32
    %c0_i32_0 = arith.constant 0 : i32
    %c0_i32_1 = arith.constant 0 : i32
    return %c0_i32, %arg0, %c0_i32_0 : i32, i32, i32
  }
  func.func @transform_1(%arg0: i32) -> (i32, i32) {
    %c0_i32 = arith.constant 0 : i32
    %c0_i32_0 = arith.constant 0 : i32
    return %arg0, %c0_i32 : i32, i32
  }
  func.func @transform_2(%arg0: i32) -> (i32, i32) {
    %c0_i32 = arith.constant 0 : i32
    %c0_i32_0 = arith.constant 0 : i32
    return %arg0, %c0_i32 : i32, i32
  }
  func.func @transform_3(%arg0: i32) -> (i32, i32, i32) {
    %c0_i32 = arith.constant 0 : i32
    %c0_i32_0 = arith.constant 0 : i32
    %c0_i32_1 = arith.constant 0 : i32
    return %c0_i32, %arg0, %c0_i32_0 : i32, i32, i32
  }
}

</mosaic_0001>

<bundles_post_ra>
// kernel: tpu_custom_call.1
= control target key start
LH: loop header
LB: loop body
LE: loop exit
PB: predicated region body
PF: predicated region fallthrough
CT: control target
= control target key end

     0   :  { %8 = vsyncpa [#allocation5], 0  ;;  %s310_s0 = inlined_call_operand.hbm [shape: f32[2,4,256], index: 0, kind: input, shape index: {}]   ;;  %s311_s1 = inlined_call_operand.vmem [shape: f32[4,1], index: 1, kind: input, shape index: {}]   ;;  %s312_s2 = inlined_call_operand.vmem [shape: f32[4,1], index: 2, kind: input, shape index: {}]   ;;  %s313_s3 = inlined_call_operand.hbm [shape: f32[2,4,256], index: 3, kind: output, shape index: {}]  }
   0x1   :  { %9 = vsyncpa [#allocation6], 0  ;;  %s217_s12 = smov [#allocation4]   ;;  %s169_s16 = scalar_lea.hbm %s310_s0, 256 }
   0x2   :  { %s15_s13 = sshll.u32 %s217_s12, 4  ;;  %p170_p0 = scmp.ne.s32.totalorder %s310_s0, %s169_s16  ;;  %s16_s13 = int_to_ptr.vmem [resolvable:$true] %s15_s13 }
   0x3   :  { %p173_p1 = scmp.lt.u32.totalorder %s169_s16, %s310_s0 }
   0x5   :  { %p175_p2 = pnand %p173_p1, %p170_p0 }
   0x7   :  { %178 = shalt.err (!%p175_p2)
}
   0x8   :  { %s179_s21 = scalar_lea.vmem %s16_s13, 256  ;;  %p184_p4 = scmp.lt.s32.totalorder %s16_s13, %s16_s13 }
   0x9   :  { %p180_p3 = scmp.ne.s32.totalorder %s16_s13, %s179_s21  ;;  %p185_p5 = scmp.lt.s32.totalorder %s179_s21, %s179_s21 }
   0xb   :  { %p186_p6 = por %p185_p5, %p184_p4 }
   0xd   :  { %p187_p7 = pnand %p186_p6, %p180_p3 }
   0xf   :  { %190 = shalt.err (!%p187_p7)
}
  0x10   :  { %s218_s22 = smov 128   ;;  %s219_s23 = smov 8  }
  0x11   :  { %21 = dma.hbm_to_vmem [thread:$0]  %s310_s0, 256, %s16_s13, [#allocation5], %s218_s22, %s218_s22, %s219_s23  }
  0x12   :  { %213 = dma.done.wait [#allocation5], 256  }
  0x13   :  { %214 = vsyncadd [#allocation5], 4294967040  ;;  %vm29_vm0 = vcmask 3072   ;;  %v220_v0 = vmov 0.0   ;;  %v32_v1 = vld [vmem:[#allocation4] sm:$0xff]  ;;  %vm40_vm1 = vcmask 1043456   ;;  %v113_v54 = vlaneseq }
  0x14   :  { %30 = vst.msk [vmem:[#allocation2] sm:$0xf] %vm29_vm0, %v220_v0  ;;  %31 = vst.msk [vmem:[#allocation3] sm:$0xf] %vm29_vm0, %v220_v0  ;;  %v61_v2 = vld [vmem:[#allocation4 + $0x8] sm:$0xff]  ;;  %vm33_vm2 = vcmp.ge.f32.partialorder %v32_v1, 0.0 }
  0x15   :  { %v34_v3 = vmul.f32 0.01, %v32_v1  ;;  %vm62_vm3 = vcmp.ge.f32.partialorder %v61_v2, 0.0  ;;  %v63_v4 = vmul.f32 0.01, %v61_v2  ;;  %v221_v25 = vmov 0  }
  0x16   :  { %165 = vset.pattern.permute.xlu0 %v221_v25  ;;  %166 = vset.pattern.permute.xlu1 %v221_v25  ;;  %v95_v46 = vld [vmem:[%s311_s1] sm:$0xf]  ;;  %v222_v52 = vmov 839922192   ;;  %v114_v56 = vshrl.u32 %v113_v54, 7  ;;  %s223_s1 = smov [#allocation7]  }
  0x17   :  { %v261_v5 = vsel %vm33_vm2, %v32_v1, %v34_v3  ;;  %v263_v6 = vsel %vm62_vm3, %v61_v2, %v63_v4  ;;  %v99_v49 = vld [vmem:[%s312_s2] sm:$0xf]  ;;  %v111_v53 = vunpack.c.l.s4 %v222_v52  ;;  %s146_s29 = sshll.u32 %s223_s1, 4  ;;  %s147_s29 = int_to_ptr.vmem [resolvable:$true] %s146_s29 }
  0x18   :  { %v38_v7 = vcombine.high %v261_v5, %v261_v5  ;;  %v41_v8 = vsel %vm40_vm1, %v261_v5, 0.0  ;;  %v49_v9 = vmul.f32 %v261_v5, %v261_v5  ;;  %v67_v10 = vcombine.high %v263_v6, %v263_v6  ;;  %s191_s2 = scalar_lea.vmem %s147_s29, 256  ;;  %p196_p9 = scmp.lt.s32.totalorder %s147_s29, %s147_s29 }
  0x19   :  { %v69_v11 = vsel %vm40_vm1, %v263_v6, 0.0  ;;  %v77_v12 = vmul.f32 %v263_v6, %v263_v6  ;;  %v112_v55 = vunpack.c.0.s8 %v111_v53  ;;  %p192_p8 = scmp.ne.s32.totalorder %s147_s29, %s191_s2  ;;  %p197_p10 = scmp.lt.s32.totalorder %s191_s2, %s191_s2 }
  0x1a   :  { %v42_v13 = vsel %vm40_vm1, %v38_v7, 0.0  ;;  %v51_v14 = vcombine.high %v49_v9, %v49_v9  ;;  %v53_v15 = vsel %vm40_vm1, %v49_v9, 0.0  ;;  %v70_v16 = vsel %vm40_vm1, %v67_v10, 0.0 }
  0x1b   :  { %v43_v17 = vadd.f32 %v42_v13, %v41_v8  ;;  %v71_v18 = vadd.f32 %v70_v16, %v69_v11  ;;  %v79_v19 = vcombine.high %v77_v12, %v77_v12  ;;  %v81_v20 = vsel %vm40_vm1, %v77_v12, 0.0  ;;  %v36_v26 = vld [vmem:[#allocation2] sm:$0xf]  ;;  %v48_v29 = vld [vmem:[#allocation3] sm:$0xf]  ;;  %p198_p11 = por %p197_p10, %p196_p9 }
  0x1c   :  { %v54_v21 = vsel %vm40_vm1, %v51_v14, 0.0  ;;  %v115_v57 = vsub.s32 %v112_v55, %v114_v56 }
  0x1d   :  { %44 = vadd.xlane.f32.xlu0 %v43_v17  ;;  %v55_v22 = vadd.f32 %v54_v21, %v53_v15  ;;  %72 = vadd.xlane.f32.xlu1 %v71_v18  ;;  %v82_v23 = vsel %vm40_vm1, %v79_v19, 0.0  ;;  %p199_p12 = pnand %p198_p11, %p192_p8 }
  0x1e   :  { %v83_v24 = vadd.f32 %v82_v23, %v81_v20 }
  0x21   :  { %56 = vadd.xlane.f32.xlu0 %v55_v22  ;;  %84 = vadd.xlane.f32.xlu1 %v83_v24 }
  0xaa   :  { %v45_v27 = vpop.xlane.xlu0 %44  ;;  %v73_v32 = vpop.xlane.xlu1 %72 }
  0xab   :  { %v46_v28 = vadd.f32 %v45_v27, %v36_v26 }
  0xad   :  { %47 = vst.msk [vmem:[#allocation2] sm:$0xf] %vm29_vm0, %v46_v28 }
  0xae   :  { %v57_v30 = vpop.xlane.xlu0 %56  ;;  %v85_v35 = vpop.xlane.xlu1 %84 }
  0xaf   :  { %v58_v31 = vadd.f32 %v57_v30, %v48_v29 }
  0xb1   :  { %59 = vst.msk [vmem:[#allocation3] sm:$0xf] %vm29_vm0, %v58_v31 }
  0xb4   :  { %v65_v33 = vld [vmem:[#allocation2] sm:$0xf] }
  0xb5   :  { %v74_v34 = vadd.f32 %v73_v32, %v65_v33 }
  0xb7   :  { %75 = vst.msk [vmem:[#allocation2] sm:$0xf] %vm29_vm0, %v74_v34 }
  0xb8   :  { %v76_v36 = vld [vmem:[#allocation3] sm:$0xf] }
  0xb9   :  { %v86_v37 = vadd.f32 %v85_v35, %v76_v36 }
  0xbb   :  { %87 = vst.msk [vmem:[#allocation3] sm:$0xf] %vm29_vm0, %v86_v37 }
  0xbe   :  { %v88_v38 = vld [vmem:[#allocation2] sm:$0xf] }
  0xbf   :  { %v89_v39 = vmul.f32 0.001953125, %v88_v38 }
  0xc1   :  { %v92_v42 = vmul.f32 %v89_v39, %v89_v39 }
  0xc2   :  { %v90_v40 = vld [vmem:[#allocation3] sm:$0xf] }
  0xc3   :  { %v91_v41 = vmul.f32 0.001953125, %v90_v40 }
  0xc5   :  { %v93_v43 = vsub.f32 %v91_v41, %v92_v42 }
  0xc7   :  { %v94_v44 = vmax.f32 %v93_v43, 0.0 }
  0xc9   :  { %v96_v45 = vadd.f32 1e-05, %v94_v44 }
  0xcb   :  { %167 = vrsqrt.f32 %v96_v45 }
  0xd5   :  { %v168_v47 = vpop.eup %167 }
  0xd6   :  { %v98_v48 = vmul.f32 %v168_v47, %v95_v46 }
  0xd8   :  { %108 = vperm.xlu0 %165, %v98_v48   ;;  %v100_v50 = vmul.f32 %v98_v48, %v89_v39 }
  0xda   :  { %v101_v51 = vsub.f32 %v99_v49, %v100_v50 }
  0xdc   :  { %121 = vperm.xlu1 %166, %v101_v51  }
 0x157   :  { %v109_v58 = vpop.permute.xlu0 %108 }
 0x158   :  { %v116_v59 = vrot.slane %v109_v58, %v115_v57 }
 0x15a   :  { %v118_v61 = vmul.f32 %v116_v59, %v261_v5  ;;  %v137_v62 = vmul.f32 %v116_v59, %v263_v6 }
 0x15b   :  { %v122_v60 = vpop.permute.xlu1 %121 }
 0x15c   :  { %v129_v63 = vrot.slane %v122_v60, %v115_v57 }
 0x15e   :  { %v131_v0 = vadd.f32 %v129_v63, %v118_v61  ;;  %v138_v1 = vadd.f32 %v137_v62, %v129_v63 }
 0x160   :  { %132 = vst [vmem:[#allocation7] sm:$0xff] %v131_v0  ;;  %140 = vst [vmem:[#allocation7 + $0x8] sm:$0xff] %v138_v1 }
 0x161   :  { %202 = shalt.err (!%p199_p12)
}
 0x162   :  { %s203_s5 = scalar_lea.hbm %s313_s3, 256 }
 0x163   :  { %p204_p13 = scmp.ne.s32.totalorder %s313_s3, %s203_s5  ;;  %p207_p0 = scmp.lt.u32.totalorder %s203_s5, %s313_s3 }
 0x165   :  { %p209_p1 = pnand %p207_p0, %p204_p13 }
 0x167   :  { %212 = shalt.err (!%p209_p1)
}
 0x168   :  { %152 = dma.vmem_to_hbm [thread:$0]  %s147_s29, 256, %s313_s3, [#allocation6], %s218_s22, %s218_s22, %s219_s23  }
 0x169   :  { %215 = dma.done.wait [#allocation6], 256  }
 0x16a   :  { %216 = vsyncadd [#allocation6], 4294967040 }
 0x16b   :  { %156 = vsyncpa [#allocation5], 1 }
 0x16c   :  { %157 = vsyncpa [#allocation6], 1 }

</bundles_post_ra>
